<compile_context>
chip_gen: v7x
topology: tpu7x:2x2x1
jax: 0.10.0
libtpu: 0.0.40
codegen_flags: <defaults>
</compile_context>

<pallas_src>
import functools

import jax
import jax.numpy as jnp
from jax.experimental import pallas as pl
from jax.experimental.pallas import tpu as pltpu

CURRENT_DIFFUSION_STEPS = 1000.0   # stand-in for the module-level global
_LANE = 128


def _round_up(n, m):
    return ((n + m - 1) // m) * m


def _mlp_kernel(x_ref, t_ref, w1x_ref, w1t_ref, b1_ref, w2_ref, b2_ref,
                w3_ref, b3_ref, w4_ref, b4_ref, o_ref):
    """One batch tile: fused 4-layer MLP with rank-1 t conditioning."""
    cdt = w1x_ref.dtype                                # matmul compute dtype

    # Layer 1: MXU matmul over the real features + rank-1 t update (VPU).
    # 1/steps is already folded into w1t, so this is just t * w1t.
    h = jnp.dot(x_ref[...].astype(cdt), w1x_ref[...],
                preferred_element_type=jnp.float32)
    h = h + t_ref[...] * w1t_ref[...] + b1_ref[...]
    h = jnp.maximum(h, 0.0)

    h = jnp.dot(h.astype(cdt), w2_ref[...],
                preferred_element_type=jnp.float32) + b2_ref[...]
    h = jnp.maximum(h, 0.0)

    h = jnp.dot(h.astype(cdt), w3_ref[...],
                preferred_element_type=jnp.float32) + b3_ref[...]
    h = jnp.maximum(h, 0.0)

    out = jnp.dot(h.astype(cdt), w4_ref[...],
                  preferred_element_type=jnp.float32) + b4_ref[...]
    o_ref[...] = out.astype(o_ref.dtype)               # unpadded (tb, D) store


def prepare_params(params, compute_dtype=jnp.bfloat16):
    """Split / zero-pad / cast params for the kernel.

    params = (w1, b1, w2, b2, w3, b3, w4, b4) in [in_features, out_features]
    layout (w1: [D+1, H], w2/w3: [H, H], w4: [H, D], biases: [1, F]).

    * Hidden dim is zero-padded to a multiple of 128 (numerically exact).
    * The output feature dim of w4/b4 is NOT padded -> unpadded output store.
    * Matmul weights are cast to `compute_dtype` (bf16 default, halves weight
      DMA + resident VMEM on every generation); biases and the t row stay
      f32 (VPU epilogue), and 1/steps is folded into the t row.
    """
    w1, b1, w2, b2, w3, b3, w4, b4 = params
    d_in = w1.shape[0] - 1
    h = w1.shape[1]
    d_out = w4.shape[1]
    hp = _round_up(h, _LANE)

    def pad(a, rows, cols):
        return jnp.pad(a, ((0, rows - a.shape[0]), (0, cols - a.shape[1])))

    w1x = pad(w1[:d_in], d_in, hp).astype(compute_dtype)                 # [D,  Hp]
    w1t = (pad(w1[d_in:], 1, hp) / CURRENT_DIFFUSION_STEPS).astype(jnp.float32)
    b1p = pad(b1, 1, hp).astype(jnp.float32)
    w2p = pad(w2, hp, hp).astype(compute_dtype)
    b2p = pad(b2, 1, hp).astype(jnp.float32)
    w3p = pad(w3, hp, hp).astype(compute_dtype)
    b3p = pad(b3, 1, hp).astype(jnp.float32)
    w4p = pad(w4, hp, d_out).astype(compute_dtype)                       # [Hp, D]
    b4p = b4.astype(jnp.float32)                                         # [1,  D]
    return (w1x, w1t, b1p, w2p, b2p, w3p, b3p, w4p, b4p)


def choose_tb(batch, max_tb=256):
    """Batch-tile rows per grid step (multiple of 8).

    Picks the largest tile <= max_tb that still yields >= 2 grid steps, so
    both v7x TensorCores get work. Keep max_tb at 128-256 on v5e (store-slot
    / spill pressure); sweep 256-512 on v6e only for very large batches.
    """
    bp = _round_up(max(batch, 8), 8)
    return max(8, min(max_tb, _round_up(pl.cdiv(bp, 2), 8)))


@functools.partial(jax.jit, static_argnames=("tb", "out_dtype"))
def diffusion_mlp_v2_forward(x, t, prepped, *, tb=128, out_dtype=jnp.float32):
    """x: [B, D] f32, t: [B] int/float.  Returns [B, D] in `out_dtype`."""
    w1x, w1t, b1, w2, b2, w3, b3, w4, b4 = prepped
    B, D = x.shape
    Hp = w2.shape[0]

    # Pad the batch to a whole number of TB-row tiles (zero rows, sliced off).
    Bp = _round_up(max(B, 8), tb)
    t_f = t.astype(jnp.float32).reshape(B, 1)
    if Bp != B:
        x = jnp.pad(x, ((0, Bp - B), (0, 0)))
        t_f = jnp.pad(t_f, ((0, Bp - B), (0, 0)))
    num_tiles = Bp // tb

    def weight_spec(a):
        return pl.BlockSpec(a.shape, lambda i: (0, 0))   # VMEM-resident

    flops = 2 * Bp * (D * Hp + 2 * Hp * Hp + Hp * D)
    bytes_accessed = (
        x.size * x.dtype.itemsize + t_f.size * 4
        + Bp * D * jnp.dtype(out_dtype).itemsize
        + sum(a.size * a.dtype.itemsize
              for a in (w1x, w1t, b1, w2, b2, w3, b3, w4, b4)))

    out = pl.pallas_call(
        _mlp_kernel,
        out_shape=jax.ShapeDtypeStruct((Bp, D), out_dtype),
        grid=(num_tiles,),
        in_specs=[
            pl.BlockSpec((tb, D), lambda i: (i, 0)),     # x tile
            pl.BlockSpec((tb, 1), lambda i: (i, 0)),     # t tile
            weight_spec(w1x), weight_spec(w1t), weight_spec(b1),
            weight_spec(w2), weight_spec(b2),
            weight_spec(w3), weight_spec(b3),
            weight_spec(w4), weight_spec(b4),
        ],
        out_specs=pl.BlockSpec((tb, D), lambda i: (i, 0)),  # unpadded output
        compiler_params=pltpu.CompilerParams(
            dimension_semantics=("parallel",)),
        cost_estimate=pl.CostEstimate(
            flops=flops, transcendentals=0, bytes_accessed=bytes_accessed),
    )(x, t_f, w1x, w1t, b1, w2, b2, w3, b3, w4, b4)

    return out[:B] if Bp != B else out


def init_params(key, input_dim, hidden_dim):
    """Deterministic init mimicking nn.Linear default (uniform +/- 1/sqrt(fan_in))."""
    dims = [(input_dim + 1, hidden_dim),
            (hidden_dim, hidden_dim),
            (hidden_dim, hidden_dim),
            (hidden_dim, input_dim)]
    params = []
    for (fan_in, fan_out) in dims:
        key, kw, kb = jax.random.split(key, 3)
        bound = 1.0 / jnp.sqrt(float(fan_in))
        w = jax.random.uniform(kw, (fan_in, fan_out), jnp.float32,
                               minval=-bound, maxval=bound)
        b = jax.random.uniform(kb, (1, fan_out), jnp.float32,
                               minval=-bound, maxval=bound)
        params.extend([w, b])
    return tuple(params)


def reference_forward(x, t, params):
    """Pure-JAX reference matching the PyTorch module."""
    w1, b1, w2, b2, w3, b3, w4, b4 = params
    t_norm = (t.astype(jnp.float32) / CURRENT_DIFFUSION_STEPS)[:, None]
    h = jnp.concatenate([x, t_norm], axis=1)
    h = jax.nn.relu(h @ w1 + b1)
    h = jax.nn.relu(h @ w2 + b2)
    h = jax.nn.relu(h @ w3 + b3)
    return h @ w4 + b4


if __name__ == "__main__":
    # Small shapes: batch not a tile multiple, hidden needing lane padding.
    batch, input_dim, hidden_dim = 100, 16, 32

    key = jax.random.PRNGKey(0)
    key, kx, kt = jax.random.split(key, 3)
    x = jax.random.normal(kx, (batch, input_dim), jnp.float32)
    t = jax.random.randint(kt, (batch,), 0, int(CURRENT_DIFFUSION_STEPS),
                           dtype=jnp.int32)
    params = init_params(key, input_dim, hidden_dim)
    ref = reference_forward(x, t, params)

    tb = choose_tb(batch)   # >= 2 tiles (v7x 2-TC balance), multiple of 8

    # f32 matmul path (matches the reference to accumulation-order noise).
    out_f32 = diffusion_mlp_v2_forward(
        x, t, prepare_params(params, jnp.float32), tb=tb)
    out_f32 = jax.block_until_ready(out_f32)
    assert out_f32.shape == (batch, input_dim)
    assert jnp.allclose(out_f32, ref, atol=1e-4, rtol=1e-4), \
        "f32 mismatch vs reference"

    # Default bf16-matmul / f32-accumulate path (preferred on all gens).
    out_bf16 = diffusion_mlp_v2_forward(x, t, prepare_params(params), tb=tb)
    out_bf16 = jax.block_until_ready(out_bf16)
    rel_err = jnp.linalg.norm(out_bf16 - ref) / jnp.linalg.norm(ref)
    assert float(rel_err) < 2e-2, f"bf16 relative error too large: {rel_err}"

    print("KERNEL_OK")
</pallas_src>

<mosaic_0001>
module attributes {stable_mosaic.version = 11 : i64} {
  func.func @_mlp_kernel(%arg0: i32, %arg1: memref<56x16xf32, #tpu.memory_space<vmem>>, %arg2: memref<56x1xf32, #tpu.memory_space<vmem>>, %arg3: memref<16x128xf32, #tpu.memory_space<vmem>>, %arg4: memref<1x128xf32, #tpu.memory_space<vmem>>, %arg5: memref<1x128xf32, #tpu.memory_space<vmem>>, %arg6: memref<128x128xf32, #tpu.memory_space<vmem>>, %arg7: memref<1x128xf32, #tpu.memory_space<vmem>>, %arg8: memref<128x128xf32, #tpu.memory_space<vmem>>, %arg9: memref<1x128xf32, #tpu.memory_space<vmem>>, %arg10: memref<128x16xf32, #tpu.memory_space<vmem>>, %arg11: memref<1x16xf32, #tpu.memory_space<vmem>>, %arg12: memref<56x16xf32, #tpu.memory_space<vmem>>) attributes {dimension_semantics = [#tpu.dimension_semantics<parallel>], iteration_bounds = array<i64: 2>, scalar_prefetch = 0 : i64, scratch_operands = 0 : i64, tpu.core_type = #tpu.core_type<tc>, window_params = [{transform_indices = @transform_0, window_bounds = array<i64: 56, 16>}, {transform_indices = @transform_1, window_bounds = array<i64: 56, 1>}, {pipeline_mode = #tpu.pipeline_mode<synchronous>, transform_indices = @transform_2, window_bounds = array<i64: 16, 128>}, {pipeline_mode = #tpu.pipeline_mode<synchronous>, transform_indices = @transform_3, window_bounds = array<i64: 1, 128>}, {pipeline_mode = #tpu.pipeline_mode<synchronous>, transform_indices = @transform_4, window_bounds = array<i64: 1, 128>}, {pipeline_mode = #tpu.pipeline_mode<synchronous>, transform_indices = @transform_5, window_bounds = array<i64: 128, 128>}, {pipeline_mode = #tpu.pipeline_mode<synchronous>, transform_indices = @transform_6, window_bounds = array<i64: 1, 128>}, {pipeline_mode = #tpu.pipeline_mode<synchronous>, transform_indices = @transform_7, window_bounds = array<i64: 128, 128>}, {pipeline_mode = #tpu.pipeline_mode<synchronous>, transform_indices = @transform_8, window_bounds = array<i64: 1, 128>}, {pipeline_mode = #tpu.pipeline_mode<synchronous>, transform_indices = @transform_9, window_bounds = array<i64: 128, 16>}, {pipeline_mode = #tpu.pipeline_mode<synchronous>, transform_indices = @transform_10, window_bounds = array<i64: 1, 16>}, {transform_indices = @transform_11, window_bounds = array<i64: 56, 16>}]} {
    %c0 = arith.constant 0 : index
    %c0_0 = arith.constant 0 : index
    %0 = vector.load %arg1[%c0, %c0_0] : memref<56x16xf32, #tpu.memory_space<vmem>>, vector<56x16xf32>
    %c0_1 = arith.constant 0 : index
    %c0_2 = arith.constant 0 : index
    %1 = vector.load %arg3[%c0_1, %c0_2] : memref<16x128xf32, #tpu.memory_space<vmem>>, vector<16x128xf32>
    %cst = arith.constant dense<0.000000e+00> : vector<56x128xf32>
    %2 = tpu.matmul %0, %1, %cst {dimension_numbers = #tpu.dot_dimension_numbers<[1], [0], [0], [1], [0, 0, 1, 1], [], []>} : vector<56x16xf32>, vector<16x128xf32>, vector<56x128xf32> -> vector<56x128xf32>
    %c0_3 = arith.constant 0 : index
    %c0_4 = arith.constant 0 : index
    %3 = vector.load %arg2[%c0_3, %c0_4] : memref<56x1xf32, #tpu.memory_space<vmem>>, vector<56x1xf32>
    %c0_5 = arith.constant 0 : index
    %c0_6 = arith.constant 0 : index
    %4 = vector.load %arg4[%c0_5, %c0_6] : memref<1x128xf32, #tpu.memory_space<vmem>>, vector<1x128xf32>
    %5 = vector.broadcast %3 : vector<56x1xf32> to vector<56x128xf32>
    %6 = vector.broadcast %4 : vector<1x128xf32> to vector<56x128xf32>
    %7 = arith.mulf %5, %6 : vector<56x128xf32>
    %8 = arith.addf %2, %7 : vector<56x128xf32>
    %c0_7 = arith.constant 0 : index
    %c0_8 = arith.constant 0 : index
    %9 = vector.load %arg5[%c0_7, %c0_8] : memref<1x128xf32, #tpu.memory_space<vmem>>, vector<1x128xf32>
    %10 = vector.broadcast %9 : vector<1x128xf32> to vector<56x128xf32>
    %11 = arith.addf %8, %10 : vector<56x128xf32>
    %cst_9 = arith.constant 0.000000e+00 : f32
    %12 = vector.broadcast %cst_9 : f32 to vector<56x128xf32>
    %13 = arith.maximumf %11, %12 : vector<56x128xf32>
    %c0_10 = arith.constant 0 : index
    %c0_11 = arith.constant 0 : index
    %14 = vector.load %arg6[%c0_10, %c0_11] : memref<128x128xf32, #tpu.memory_space<vmem>>, vector<128x128xf32>
    %cst_12 = arith.constant dense<0.000000e+00> : vector<56x128xf32>
    %15 = tpu.matmul %13, %14, %cst_12 {dimension_numbers = #tpu.dot_dimension_numbers<[1], [0], [0], [1], [0, 0, 1, 1], [], []>} : vector<56x128xf32>, vector<128x128xf32>, vector<56x128xf32> -> vector<56x128xf32>
    %c0_13 = arith.constant 0 : index
    %c0_14 = arith.constant 0 : index
    %16 = vector.load %arg7[%c0_13, %c0_14] : memref<1x128xf32, #tpu.memory_space<vmem>>, vector<1x128xf32>
    %17 = vector.broadcast %16 : vector<1x128xf32> to vector<56x128xf32>
    %18 = arith.addf %15, %17 : vector<56x128xf32>
    %cst_15 = arith.constant 0.000000e+00 : f32
    %19 = vector.broadcast %cst_15 : f32 to vector<56x128xf32>
    %20 = arith.maximumf %18, %19 : vector<56x128xf32>
    %c0_16 = arith.constant 0 : index
    %c0_17 = arith.constant 0 : index
    %21 = vector.load %arg8[%c0_16, %c0_17] : memref<128x128xf32, #tpu.memory_space<vmem>>, vector<128x128xf32>
    %cst_18 = arith.constant dense<0.000000e+00> : vector<56x128xf32>
    %22 = tpu.matmul %20, %21, %cst_18 {dimension_numbers = #tpu.dot_dimension_numbers<[1], [0], [0], [1], [0, 0, 1, 1], [], []>} : vector<56x128xf32>, vector<128x128xf32>, vector<56x128xf32> -> vector<56x128xf32>
    %c0_19 = arith.constant 0 : index
    %c0_20 = arith.constant 0 : index
    %23 = vector.load %arg9[%c0_19, %c0_20] : memref<1x128xf32, #tpu.memory_space<vmem>>, vector<1x128xf32>
    %24 = vector.broadcast %23 : vector<1x128xf32> to vector<56x128xf32>
    %25 = arith.addf %22, %24 : vector<56x128xf32>
    %cst_21 = arith.constant 0.000000e+00 : f32
    %26 = vector.broadcast %cst_21 : f32 to vector<56x128xf32>
    %27 = arith.maximumf %25, %26 : vector<56x128xf32>
    %c0_22 = arith.constant 0 : index
    %c0_23 = arith.constant 0 : index
    %28 = vector.load %arg10[%c0_22, %c0_23] : memref<128x16xf32, #tpu.memory_space<vmem>>, vector<128x16xf32>
    %cst_24 = arith.constant dense<0.000000e+00> : vector<56x16xf32>
    %29 = tpu.matmul %27, %28, %cst_24 {dimension_numbers = #tpu.dot_dimension_numbers<[1], [0], [0], [1], [0, 0, 1, 1], [], []>} : vector<56x128xf32>, vector<128x16xf32>, vector<56x16xf32> -> vector<56x16xf32>
    %c0_25 = arith.constant 0 : index
    %c0_26 = arith.constant 0 : index
    %30 = vector.load %arg11[%c0_25, %c0_26] : memref<1x16xf32, #tpu.memory_space<vmem>>, vector<1x16xf32>
    %31 = vector.broadcast %30 : vector<1x16xf32> to vector<56x16xf32>
    %32 = arith.addf %29, %31 : vector<56x16xf32>
    %c0_27 = arith.constant 0 : index
    %c0_28 = arith.constant 0 : index
    %33 = vector.load %arg12[%c0_27, %c0_28] : memref<56x16xf32, #tpu.memory_space<vmem>>, vector<56x16xf32>
    tpu.vector_store %arg12[%c0_27, %c0_28], %32 {strides = array<i32>} : memref<56x16xf32, #tpu.memory_space<vmem>>, vector<56x16xf32>,
    return
  }
  func.func @transform_0(%arg0: i32) -> (i32, i32) {
    %c0_i32 = arith.constant 0 : i32
    %c0_i32_0 = arith.constant 0 : i32
    return %arg0, %c0_i32 : i32, i32
  }
  func.func @transform_1(%arg0: i32) -> (i32, i32) {
    %c0_i32 = arith.constant 0 : i32
    %c0_i32_0 = arith.constant 0 : i32
    return %arg0, %c0_i32 : i32, i32
  }
  func.func @transform_2(%arg0: i32) -> (i32, i32) {
    %c0_i32 = arith.constant 0 : i32
    %c0_i32_0 = arith.constant 0 : i32
    %c0_i32_1 = arith.constant 0 : i32
    return %c0_i32, %c0_i32_0 : i32, i32
  }
  func.func @transform_3(%arg0: i32) -> (i32, i32) {
    %c0_i32 = arith.constant 0 : i32
    %c0_i32_0 = arith.constant 0 : i32
    %c0_i32_1 = arith.constant 0 : i32
    return %c0_i32, %c0_i32_0 : i32, i32
  }
  func.func @transform_4(%arg0: i32) -> (i32, i32) {
    %c0_i32 = arith.constant 0 : i32
    %c0_i32_0 = arith.constant 0 : i32
    %c0_i32_1 = arith.constant 0 : i32
    return %c0_i32, %c0_i32_0 : i32, i32
  }
  func.func @transform_5(%arg0: i32) -> (i32, i32) {
    %c0_i32 = arith.constant 0 : i32
    %c0_i32_0 = arith.constant 0 : i32
    %c0_i32_1 = arith.constant 0 : i32
    return %c0_i32, %c0_i32_0 : i32, i32
  }
  func.func @transform_6(%arg0: i32) -> (i32, i32) {
    %c0_i32 = arith.constant 0 : i32
    %c0_i32_0 = arith.constant 0 : i32
    %c0_i32_1 = arith.constant 0 : i32
    return %c0_i32, %c0_i32_0 : i32, i32
  }
  func.func @transform_7(%arg0: i32) -> (i32, i32) {
    %c0_i32 = arith.constant 0 : i32
    %c0_i32_0 = arith.constant 0 : i32
    %c0_i32_1 = arith.constant 0 : i32
    return %c0_i32, %c0_i32_0 : i32, i32
  }
  func.func @transform_8(%arg0: i32) -> (i32, i32) {
    %c0_i32 = arith.constant 0 : i32
    %c0_i32_0 = arith.constant 0 : i32
    %c0_i32_1 = arith.constant 0 : i32
    return %c0_i32, %c0_i32_0 : i32, i32
  }
  func.func @transform_9(%arg0: i32) -> (i32, i32) {
    %c0_i32 = arith.constant 0 : i32
    %c0_i32_0 = arith.constant 0 : i32
    %c0_i32_1 = arith.constant 0 : i32
    return %c0_i32, %c0_i32_0 : i32, i32
  }
  func.func @transform_10(%arg0: i32) -> (i32, i32) {
    %c0_i32 = arith.constant 0 : i32
    %c0_i32_0 = arith.constant 0 : i32
    %c0_i32_1 = arith.constant 0 : i32
    return %c0_i32, %c0_i32_0 : i32, i32
  }
  func.func @transform_11(%arg0: i32) -> (i32, i32) {
    %c0_i32 = arith.constant 0 : i32
    %c0_i32_0 = arith.constant 0 : i32
    return %arg0, %c0_i32 : i32, i32
  }
}

</mosaic_0001>

<bundles_post_ra>
// kernel: diffusion_mlp_v2_forward.1
= control target key start
LH: loop header
LB: loop body
LE: loop exit
PB: predicated region body
PF: predicated region fallthrough
CT: control target
= control target key end

     0   :  { %s1539_s17 = smov 0   ;;  %s1850_s0 = inlined_call_operand.vmem [shape: f32[112,16], index: 0, kind: input, shape index: {}]   ;;  %s1851_s1 = inlined_call_operand.vmem [shape: f32[112,1], index: 1, kind: input, shape index: {}]   ;;  %s1852_s2 = inlined_call_operand.vmem [shape: f32[16,128], index: 2, kind: input, shape index: {}]   ;;  %s1853_s3 = inlined_call_operand.vmem [shape: f32[1,128], index: 3, kind: input, shape index: {}]   ;;  %s1854_s4 = inlined_call_operand.vmem [shape: f32[1,128], index: 4, kind: input, shape index: {}]   ;;  %s1855_s5 = inlined_call_operand.vmem [shape: f32[128,128], index: 5, kind: input, shape index: {}]   ;;  %s1856_s6 = inlined_call_operand.vmem [shape: f32[1,128], index: 6, kind: input, shape index: {}]   ;;  %s1857_s7 = inlined_call_operand.vmem [shape: f32[128,128], index: 7, kind: input, shape index: {}]   ;;  %s1858_s8 = inlined_call_operand.vmem [shape: f32[1,128], index: 8, kind: input, shape index: {}]   ;;  %s1859_s9 = inlined_call_operand.vmem [shape: f32[128,16], index: 9, kind: input, shape index: {}]   ;;  %s1860_s10 = inlined_call_operand.vmem [shape: f32[1,16], index: 10, kind: input, shape index: {}]   ;;  %s1861_s11 = inlined_call_operand.vmem [shape: f32[112,16], index: 11, kind: output, shape index: {}]  }
   0x1 LB: > { %s1078_s18 = sadd.s32 4294967295, %s1473_s17   ;;  %p1082_p0 = scmp.ge.s32.totalorder %s1473_s17, 1  ;;  %s1473_s17 = sphi %s1539_s17, %s21_s17  }
   0x2   : > { %p349_p1 = scmp.lt.s32.totalorder %s1473_s17, 3 }
   0x4   : > { %p350_p2 = pnand %p1082_p0, %p349_p1 }
   0x5   : > { %v419_v0 = vld [vmem:[%s1852_s2] sm:$0xff] (!%p350_p2)  ;;  %v420_v1 = vld [vmem:[%s1852_s2 + $0x8] sm:$0xff] (!%p350_p2)  ;;  %s394_s23 = smul.u32 (!%p350_p2), 7, %s1078_s18  ;;  %v1475_v2 = vmov (!%p350_p2), 0.0|0.0   ;;  %vm1476_vm0 = vmmov (!%p350_p2), 0   ;;  %v1477_v4 = vmov (!%p350_p2), 0.0  }
   0x6   : > { %353 = sbr.rel (%p350_p2) target bundleno = 906 (0x38a), region = 64  ;;  %1362 = vmatprep.subr.bf16.mxu0 (!%p350_p2), %v1475_v2  ;;  %v1363_v3 = vpack.c.bf16 (!%p350_p2), %v420_v1, %v419_v0  ;;  %1182 = vmatprep.mubr.msk.f32.mxu0 (!%p350_p2), %vm1476_vm0, %v1477_v4  ;;  %v620_v5 = vld [vmem:[%s1855_s5] sm:$0xff] (!%p350_p2)  ;;  %v621_v6 = vld [vmem:[%s1855_s5 + $0x8] sm:$0xff] (!%p350_p2)  ;;  %v622_v7 = vld [vmem:[%s1855_s5 + $0x10] sm:$0xff] (!%p350_p2)  ;;  %v1478_v8 = vmov (!%p350_p2), 0   ;;  %vm477_vm1 = vcmask (!%p350_p2), 130048  }
   0x7   : > { %p395_p3 = scmp.lt.s32.totalorder (!%p350_p2), %s394_s23, 13  ;;  %1465 = vset.pattern.permute.xlu0 (!%p350_p2), %v1478_v8  ;;  %1466 = vset.pattern.permute.xlu1 (!%p350_p2), %v1478_v8  ;;  %v1366_v9 = vpack.c.bf16 (!%p350_p2), %v621_v6, %v620_v5  ;;  %v623_v10 = vld [vmem:[%s1855_s5 + $0x18] sm:$0xff] (!%p350_p2)  ;;  %v624_v12 = vld [vmem:[%s1855_s5 + $0x20] sm:$0xff] (!%p350_p2)  ;;  %v625_v13 = vld [vmem:[%s1855_s5 + $0x28] sm:$0xff] (!%p350_p2) }
   0x8   : > { %1364 = vmatpush3.bf16.msra.mxu0 (!%p350_p2), %v1363_v3  ;;  %1365 = vmatprep.subr.bf16.mxu1 (!%p350_p2), %v1475_v2  ;;  %v1369_v11 = vpack.c.bf16 (!%p350_p2), %v623_v10, %v622_v7  ;;  %v1372_v15 = vpack.c.bf16 (!%p350_p2), %v625_v13, %v624_v12  ;;  %v626_v20 = vld [vmem:[%s1855_s5 + $0x30] sm:$0xff] (!%p350_p2)  ;;  %v627_v22 = vld [vmem:[%s1855_s5 + $0x38] sm:$0xff] (!%p350_p2)  ;;  %v628_v25 = vld [vmem:[%s1855_s5 + $0x40] sm:$0xff] (!%p350_p2) }
   0x9   : > { %1367 = vmatpush3.bf16.msra.mxu1 (!%p350_p2), %v1366_v9  ;;  %1235 = vmatprep.mubr.msk.f32.mxu1 (!%p350_p2), %vm1476_vm0, %v1477_v4  ;;  %v1375_v24 = vpack.c.bf16 (!%p350_p2), %v627_v22, %v626_v20  ;;  %v629_v26 = vld [vmem:[%s1855_s5 + $0x48] sm:$0xff] (!%p350_p2)  ;;  %v630_v31 = vld [vmem:[%s1855_s5 + $0x50] sm:$0xff] (!%p350_p2)  ;;  %v631_v32 = vld [vmem:[%s1855_s5 + $0x58] sm:$0xff] (!%p350_p2) }
   0xa   : > { %1368 = vmatprep.subr.bf16.mxu1 (!%p350_p2), %v1475_v2  ;;  %1389 = vmatprep.subr.bf16.mxu0 (!%p350_p2), %v1475_v2  ;;  %v1378_v28 = vpack.c.bf16 (!%p350_p2), %v629_v26, %v628_v25  ;;  %v1381_v34 = vpack.c.bf16 (!%p350_p2), %v631_v32, %v630_v31  ;;  %v632_v38 = vld [vmem:[%s1855_s5 + $0x60] sm:$0xff] (!%p350_p2)  ;;  %v633_v39 = vld [vmem:[%s1855_s5 + $0x68] sm:$0xff] (!%p350_p2)  ;;  %v634_v41 = vld [vmem:[%s1855_s5 + $0x70] sm:$0xff] (!%p350_p2) }
   0xb   : > { %v1384_v40 = vpack.c.bf16 (!%p350_p2), %v633_v39, %v632_v38  ;;  %v635_v42 = vld [vmem:[%s1855_s5 + $0x78] sm:$0xff] (!%p350_p2)  ;;  %v750_v44 = vld [vmem:[%s1857_s7] sm:$0xff] (!%p350_p2)  ;;  %v751_v45 = vld [vmem:[%s1857_s7 + $0x8] sm:$0xff] (!%p350_p2) }
   0xc   : > { %v1387_v43 = vpack.c.bf16 (!%p350_p2), %v635_v42, %v634_v41  ;;  %v752_v46 = vld [vmem:[%s1857_s7 + $0x10] sm:$0xff] (!%p350_p2)  ;;  %v1390_v47 = vpack.c.bf16 (!%p350_p2), %v751_v45, %v750_v44  ;;  %v753_v48 = vld [vmem:[%s1857_s7 + $0x18] sm:$0xff] (!%p350_p2)  ;;  %v754_v50 = vld [vmem:[%s1857_s7 + $0x20] sm:$0xff] (!%p350_p2) }
   0xd   : > { %s1863_s23 = smov (!%p395_p3, %s394_s23), 13  ;;  %1370 = vmatpush3.bf16.msra.mxu1 %v1369_v11  ;;  %v1393_v49 = vpack.c.bf16 %v753_v48, %v752_v46  ;;  %v755_v51 = vld [vmem:[%s1857_s7 + $0x28] sm:$0xff]  ;;  %v756_v53 = vld [vmem:[%s1857_s7 + $0x30] sm:$0xff]  ;;  %v757_v54 = vld [vmem:[%s1857_s7 + $0x38] sm:$0xff] }
   0xe   : > { %s1579_s18 = sshll.u32 %s1863_s23, 3  ;;  %1371 = vmatprep.subr.bf16.mxu1 %v1475_v2  ;;  %v1396_v52 = vpack.c.bf16 %v755_v51, %v754_v50  ;;  %v1399_v55 = vpack.c.bf16 %v757_v54, %v756_v53  ;;  %v758_v56 = vld [vmem:[%s1857_s7 + $0x40] sm:$0xff]  ;;  %v759_v57 = vld [vmem:[%s1857_s7 + $0x48] sm:$0xff]  ;;  %v760_v59 = vld [vmem:[%s1857_s7 + $0x50] sm:$0xff] }
   0xf   : > { %s1585_s21 = scalar_lea.vmem %s1850_s0, %s1579_s18  ;;  %s1591_s25 = scalar_lea.vmem %s1851_s1, %s1579_s18  ;;  %v1402_v58 = vpack.c.bf16 %v759_v57, %v758_v56  ;;  %v761_v60 = vld [vmem:[%s1857_s7 + $0x58] sm:$0xff]  ;;  %v762_v62 = vld [vmem:[%s1857_s7 + $0x60] sm:$0xff]  ;;  %v763_v63 = vld [vmem:[%s1857_s7 + $0x68] sm:$0xff] }
  0x10   : > { %v412_v14 = vld [vmem:[%s1585_s21] sm:$0xff]  ;;  %v413_v16 = vld [vmem:[%s1585_s21 + $0x8] sm:$0xff]  ;;  %v423_v18 = vld [vmem:[%s1591_s25 + $0x10] sm:$0xff]  ;;  %v1405_v61 = vpack.c.bf16 %v761_v60, %v760_v59  ;;  %v1408_v0 = vpack.c.bf16 %v763_v63, %v762_v62  ;;  %s410_s19 = scalar_lea.vmem %s1861_s11, %s1579_s18 }
  0x11   : > { %1183 = vmatmul.mubr.msk.f32.vlgmr.msra.gmra.mrb[0].mxu0 %vm477_vm1, %v412_v14  ;;  %v421_v17 = vld [vmem:[%s1591_s25] sm:$0xff]  ;;  %v422_v19 = vld [vmem:[%s1591_s25 + $0x8] sm:$0xff]  ;;  %441 = vperm.xlu1 %1466, %v423_v18   ;;  %v424_v21 = vld [vmem:[%s1591_s25 + $0x18] sm:$0xff] }
  0x12   : > { %1185 = vmatprep.mubr.msk.f32.mxu0 %vm1476_vm0, %v1477_v4  ;;  %431 = vperm.xlu0 %1465, %v421_v17   ;;  %v414_v23 = vld [vmem:[%s1585_s21 + $0x10] sm:$0xff]  ;;  %v425_v27 = vld [vmem:[%s1591_s25 + $0x20] sm:$0xff]  ;;  %v426_v29 = vld [vmem:[%s1591_s25 + $0x28] sm:$0xff] }
  0x13   : > { %1373 = vmatpush3.bf16.msra.mxu1 %v1372_v15  ;;  %v415_v30 = vld [vmem:[%s1585_s21 + $0x18] sm:$0xff]  ;;  %v427_v33 = vld [vmem:[%s1591_s25 + $0x30] sm:$0xff]  ;;  %v416_v35 = vld [vmem:[%s1585_s21 + $0x20] sm:$0xff]  ;;  %1391 = vmatpush3.bf16.msra.mxu0 %v1390_v47 }
  0x14   : > { %1374 = vmatprep.subr.bf16.mxu1 %v1475_v2  ;;  %v417_v36 = vld [vmem:[%s1585_s21 + $0x28] sm:$0xff]  ;;  %v418_v37 = vld [vmem:[%s1585_s21 + $0x30] sm:$0xff]  ;;  %1392 = vmatprep.subr.bf16.mxu0 %v1475_v2  ;;  %v1086_v1 = vld [vmem:[%s1853_s3] ss:$0 sm:$0xff] }
  0x15   : > { %1186 = vmatmul.mubr.msk.f32.gmra.mrb[2].mxu0 %vm477_vm1, %v413_v16  ;;  %446 = vperm.xlu1 %1466, %v424_v21   ;;  %v1094_v7 = vld [vmem:[%s1854_s4] ss:$0 sm:$0xff]  ;;  %v764_v54 = vld [vmem:[%s1857_s7 + $0x70] sm:$0xff] }
  0x16   : > { %1188 = vmatprep.mubr.msk.f32.mxu0 %vm1476_vm0, %v1477_v4  ;;  %436 = vperm.xlu0 %1465, %v422_v19   ;;  %v880_v57 = vld [vmem:[%s1859_s9] sm:$0xff]  ;;  %v882_v60 = vld [vmem:[%s1859_s9 + $0x10] sm:$0xff] }
  0x17   : > { %1376 = vmatpush3.bf16.msra.mxu1 %v1375_v24  ;;  %1394 = vmatpush3.bf16.msra.mxu0 %v1393_v49  ;;  %v884_v63 = vld [vmem:[%s1859_s9 + $0x20] sm:$0xff] }
  0x18   : > { %1377 = vmatprep.subr.bf16.mxu1 %v1475_v2  ;;  %1395 = vmatprep.subr.bf16.mxu0 %v1475_v2 }
  0x19   : > { %1189 = vmatmul.mubr.msk.f32.gmra.mrb[4].mxu0 %vm477_vm1, %v414_v23  ;;  %456 = vperm.xlu1 %1466, %v426_v29  }
  0x1a   : > { %1191 = vmatprep.mubr.msk.f32.mxu0 %vm1476_vm0, %v1477_v4  ;;  %451 = vperm.xlu0 %1465, %v425_v27  }
  0x1b   : > { %1379 = vmatpush3.bf16.msra.mxu1 %v1378_v28  ;;  %1397 = vmatpush3.bf16.msra.mxu0 %v1396_v52 }
  0x1c   : > { %1380 = vmatprep.subr.bf16.mxu1 %v1475_v2  ;;  %1398 = vmatprep.subr.bf16.mxu0 %v1475_v2 }
  0x1d   : > { %1192 = vmatmul.mubr.msk.f32.gmra.mrb[6].mxu0 %vm477_vm1, %v415_v30 }
  0x1e   : > { %1194 = vmatprep.mubr.msk.f32.mxu0 %vm1476_vm0, %v1477_v4  ;;  %461 = vperm.xlu0 %1465, %v427_v33  }
  0x1f   : > { %1382 = vmatpush3.bf16.msra.mxu1 %v1381_v34  ;;  %1400 = vmatpush3.bf16.msra.mxu0 %v1399_v55  ;;  %v765_v55 = vld [vmem:[%s1857_s7 + $0x78] sm:$0xff] }
  0x20   : > { %1383 = vmatprep.subr.bf16.mxu1 %v1475_v2  ;;  %1401 = vmatprep.subr.bf16.mxu0 %v1475_v2  ;;  %v1411_v56 = vpack.c.bf16 %v765_v55, %v764_v54 }
  0x21   : > { %1195 = vmatmul.mubr.msk.f32.gmra.mrb[8].mxu0 %vm477_vm1, %v416_v35 }
  0x22   : > { %1197 = vmatprep.mubr.msk.f32.mxu0 %vm1476_vm0, %v1477_v4 }
  0x23   : > { %1385 = vmatpush3.bf16.msra.mxu1 %v1384_v40  ;;  %1403 = vmatpush3.bf16.msra.mxu0 %v1402_v58  ;;  %v881_v58 = vld [vmem:[%s1859_s9 + $0x8] sm:$0xff] }
  0x24   : > { %1386 = vmatprep.subr.bf16.mxu1 %v1475_v2  ;;  %1404 = vmatprep.subr.bf16.mxu0 %v1475_v2  ;;  %v1414_v59 = vpack.c.bf16 %v881_v58, %v880_v57 }
  0x25   : > { %1198 = vmatmul.mubr.msk.f32.gmra.mrb[10].mxu0 %vm477_vm1, %v417_v36 }
  0x26   : > { %1200 = vmatprep.mubr.msk.f32.mxu0 %vm1476_vm0, %v1477_v4 }
  0x27   : > { %1388 = vmatpush3.bf16.msra.mxu1 %v1387_v43  ;;  %1406 = vmatpush3.bf16.msra.mxu0 %v1405_v61  ;;  %v883_v61 = vld [vmem:[%s1859_s9 + $0x18] sm:$0xff] }
  0x28   : > { %1437 = vmatprep.subr.bf16.mxu1 %v1475_v2  ;;  %1407 = vmatprep.subr.bf16.mxu0 %v1475_v2  ;;  %v1417_v62 = vpack.c.bf16 %v883_v61, %v882_v60 }
  0x29   : > { %1201 = vmatmul.mubr.msk.f32.gmra.mrb[12].mxu0 %vm477_vm1, %v418_v37 }
  0x2a   : > { %1288 = vmatprep.mubr.msk.f32.mxu0 %vm1476_vm0, %v1477_v4 }
  0x2b   : > { %1409 = vmatpush3.bf16.msra.mxu0 %v1408_v0  ;;  %v885_v0 = vld [vmem:[%s1859_s9 + $0x28] sm:$0xff] }
  0x2c   : > { %1410 = vmatprep.subr.bf16.mxu0 %v1475_v2 }
  0x2f   : > { %1412 = vmatpush3.bf16.msra.mxu0 %v1411_v56 }
  0x30   : > { %1413 = vmatprep.subr.bf16.mxu0 %v1475_v2 }
  0x90   : > { %v442_v13 = vpop.permute.xlu1 %441 }
  0x91   : > { %v432_v3 = vpop.permute.xlu0 %431  ;;  %v472_v15 = vmul.f32 %v1086_v1, %v442_v13  ;;  %v892_v13 = vld [vmem:[%s1859_s9 + $0x60] sm:$0xff] }
  0x92   : > { %v470_v5 = vmul.f32 %v1086_v1, %v432_v3  ;;  %v886_v3 = vld [vmem:[%s1859_s9 + $0x30] sm:$0xff] }
  0x94   : > { %v447_v24 = vpop.permute.xlu1 %446 }
  0x95   : > { %v437_v10 = vpop.permute.xlu0 %436  ;;  %v473_v25 = vmul.f32 %v1086_v1, %v447_v24 }
  0x96   : > { %v471_v11 = vmul.f32 %v1086_v1, %v437_v10  ;;  %v890_v10 = vld [vmem:[%s1859_s9 + $0x50] sm:$0xff] }
  0x98   : > { %v457_v34 = vpop.permute.xlu1 %456 }
  0x99   : > { %v452_v31 = vpop.permute.xlu0 %451  ;;  %v475_v39 = vmul.f32 %v1086_v1, %v457_v34 }
  0x9a   : > { %v474_v32 = vmul.f32 %v1086_v1, %v452_v31 }
  0x9d   : > { %v462_v41 = vpop.permute.xlu0 %461 }
  0x9e   : > { %v476_v46 = vmul.f32 %v1086_v1, %v462_v41  ;;  %v1420_v1 = vpack.c.bf16 %v885_v0, %v884_v63 }
  0xe4   : > { %v565_v6 = vpop.f32.mrb[0].mxu0 }
  0xe5   : > { %v566_v8 = vadd.f32 %v565_v6, %v470_v5  ;;  %v1184_v9 = vpop.f32.mrb[1].mxu0  ;;  %v887_v5 = vld [vmem:[%s1859_s9 + $0x38] sm:$0xff] }
  0xe6   : > { %v1423_v6 = vpack.c.bf16 %v887_v5, %v886_v3 }
  0xe7   : > { %v606_v12 = vadd.f32 %v1094_v7, %v566_v8  ;;  %v889_v8 = vld [vmem:[%s1859_s9 + $0x48] sm:$0xff] }
  0xe8   : > { %v570_v14 = vpop.f32.mrb[2].mxu0 }
  0xe9   : > { %v613_v16 = vmax.f32 %v606_v12, 0.0  ;;  %v571_v17 = vadd.f32 %v570_v14, %v471_v11  ;;  %v1187_v18 = vpop.f32.mrb[3].mxu0  ;;  %v891_v11 = vld [vmem:[%s1859_s9 + $0x58] sm:$0xff]  ;;  %v893_v14 = vld [vmem:[%s1859_s9 + $0x68] sm:$0xff] }
  0xea   : > { %v1429_v12 = vpack.c.bf16 %v891_v11, %v890_v10 }
  0xeb   : > { %v607_v19 = vadd.f32 %v1094_v7, %v571_v17  ;;  %1236 = vmatmul.mubr.f32.vlgmr.msra.gmra.mrb[0].mxu1 %v613_v16  ;;  %v1095_v16 = vld [vmem:[%s1856_s6] ss:$0 sm:$0xff] }
  0xec   : > { %v575_v20 = vpop.f32.mrb[4].mxu0  ;;  %1238 = vmatprep.mubr.msk.f32.mxu1 %vm1476_vm0, %v1477_v4  ;;  %1445 = vmatpush3.bf16.msra.mxu1 %v1414_v59 }
  0xed   : > { %v614_v21 = vmax.f32 %v607_v19, 0.0  ;;  %v576_v22 = vadd.f32 %v575_v20, %v472_v15  ;;  %v1190_v23 = vpop.f32.mrb[5].mxu0  ;;  %1438 = vmatprep.subr.bf16.mxu1 %v1475_v2  ;;  %v1432_v15 = vpack.c.bf16 %v893_v14, %v892_v13  ;;  %v1097_v14 = vld [vmem:[%s1860_s10] ss:$0 sm:$0xff] }
  0xef   : > { %v608_v26 = vadd.f32 %v1094_v7, %v576_v22  ;;  %1239 = vmatmul.mubr.f32.gmra.mrb[2].mxu1 %v614_v21 }
  0xf0   : > { %v580_v27 = vpop.f32.mrb[6].mxu0  ;;  %1241 = vmatprep.mubr.msk.f32.mxu1 %vm1476_vm0, %v1477_v4  ;;  %1446 = vmatpush3.bf16.msra.mxu1 %v1417_v62 }
  0xf1   : > { %v615_v28 = vmax.f32 %v608_v26, 0.0  ;;  %v581_v29 = vadd.f32 %v580_v27, %v473_v25  ;;  %v1193_v30 = vpop.f32.mrb[7].mxu0  ;;  %1439 = vmatprep.subr.bf16.mxu1 %v1475_v2 }
  0xf3   : > { %v609_v33 = vadd.f32 %v1094_v7, %v581_v29  ;;  %1242 = vmatmul.mubr.f32.gmra.mrb[4].mxu1 %v615_v28 }
  0xf4   : > { %v585_v35 = vpop.f32.mrb[8].mxu0  ;;  %1244 = vmatprep.mubr.msk.f32.mxu1 %vm1476_vm0, %v1477_v4  ;;  %1447 = vmatpush3.bf16.msra.mxu1 %v1420_v1 }
  0xf5   : > { %v616_v36 = vmax.f32 %v609_v33, 0.0  ;;  %v586_v37 = vadd.f32 %v585_v35, %v474_v32  ;;  %v1196_v38 = vpop.f32.mrb[9].mxu0  ;;  %1440 = vmatprep.subr.bf16.mxu1 %v1475_v2 }
  0xf7   : > { %v610_v40 = vadd.f32 %v1094_v7, %v586_v37  ;;  %1245 = vmatmul.mubr.f32.gmra.mrb[6].mxu1 %v616_v36 }
  0xf8   : > { %v590_v42 = vpop.f32.mrb[10].mxu0  ;;  %1247 = vmatprep.mubr.msk.f32.mxu1 %vm1476_vm0, %v1477_v4  ;;  %1448 = vmatpush3.bf16.msra.mxu1 %v1423_v6 }
  0xf9   : > { %v617_v43 = vmax.f32 %v610_v40, 0.0  ;;  %v591_v44 = vadd.f32 %v590_v42, %v475_v39  ;;  %v1199_v45 = vpop.f32.mrb[11].mxu0  ;;  %1441 = vmatprep.subr.bf16.mxu1 %v1475_v2 }
  0xfa   : > { %v894_v45 = vld [vmem:[%s1859_s9 + $0x70] sm:$0xff] }
  0xfb   : > { %v611_v47 = vadd.f32 %v1094_v7, %v591_v44  ;;  %1248 = vmatmul.mubr.f32.gmra.mrb[8].mxu1 %v617_v43 }
  0xfc   : > { %v595_v48 = vpop.f32.mrb[12].mxu0  ;;  %1250 = vmatprep.mubr.msk.f32.mxu1 %vm1476_vm0, %v1477_v4 }
  0xfd   : > { %v618_v49 = vmax.f32 %v611_v47, 0.0  ;;  %v596_v50 = vadd.f32 %v595_v48, %v476_v46  ;;  %v1202_v51 = vpop.f32.mrb[13].mxu0  ;;  %v895_v46 = vld [vmem:[%s1859_s9 + $0x78] sm:$0xff]  ;;  %v1096_v48 = vld [vmem:[%s1858_s8] ss:$0 sm:$0xff] }
  0xfe   : > { %v1435_v47 = vpack.c.bf16 %v895_v46, %v894_v45 }
  0xff   : > { %v612_v52 = vadd.f32 %v1094_v7, %v596_v50  ;;  %1251 = vmatmul.mubr.f32.gmra.mrb[10].mxu1 %v618_v49  ;;  %v888_v7 = vld [vmem:[%s1859_s9 + $0x40] sm:$0xff] }
 0x100   : > { %1253 = vmatprep.mubr.msk.f32.mxu1 %vm1476_vm0, %v1477_v4  ;;  %v1426_v9 = vpack.c.bf16 %v889_v8, %v888_v7 }
 0x101   : > { %v619_v53 = vmax.f32 %v612_v52, 0.0 }
 0x102   : > { %1449 = vmatpush3.bf16.msra.mxu1 %v1426_v9 }
 0x103   : > { %1254 = vmatmul.mubr.f32.gmra.mrb[12].mxu1 %v619_v53  ;;  %1442 = vmatprep.subr.bf16.mxu1 %v1475_v2 }
 0x104   : > { %1350 = vmatprep.mubr.msk.f32.mxu1 %vm1476_vm0, %v1477_v4 }
 0x106   : > { %1450 = vmatpush3.bf16.msra.mxu1 %v1429_v12 }
 0x107   : > { %1443 = vmatprep.subr.bf16.mxu1 %v1475_v2 }
 0x10a   : > { %1451 = vmatpush3.bf16.msra.mxu1 %v1432_v15 }
 0x10b   : > { %1444 = vmatprep.subr.bf16.mxu1 %v1475_v2 }
 0x10e   : > { %1452 = vmatpush3.bf16.msra.mxu1 %v1435_v47 }
 0x1be   : > { %v709_v17 = vpop.f32.mrb[0].mxu1 }
 0x1bf   : > { %v710_v18 = vadd.f32 %v1095_v16, %v709_v17  ;;  %v1237_v19 = vpop.f32.mrb[1].mxu1 }
 0x1c1   : > { %v743_v20 = vmax.f32 %v710_v18, 0.0 }
 0x1c2   : > { %v714_v21 = vpop.f32.mrb[2].mxu1 }
 0x1c3   : > { %v715_v22 = vadd.f32 %v1095_v16, %v714_v21  ;;  %v1240_v23 = vpop.f32.mrb[3].mxu1  ;;  %1289 = vmatmul.mubr.f32.vlgmr.msra.gmra.mrb[14].mxu0 %v743_v20 }
 0x1c4   : > { %1291 = vmatprep.mubr.msk.f32.mxu0 %vm1476_vm0, %v1477_v4  ;;  %1415 = vmatpush3.bf16.msra.mxu0 %v1414_v59 }
 0x1c5   : > { %v744_v24 = vmax.f32 %v715_v22, 0.0  ;;  %1416 = vmatprep.subr.bf16.mxu0 %v1475_v2 }
 0x1c6   : > { %v719_v25 = vpop.f32.mrb[4].mxu1 }
 0x1c7   : > { %v720_v26 = vadd.f32 %v1095_v16, %v719_v25  ;;  %v1243_v27 = vpop.f32.mrb[5].mxu1  ;;  %1292 = vmatmul.mubr.f32.gmra.mrb[16].mxu0 %v744_v24 }
 0x1c8   : > { %1294 = vmatprep.mubr.msk.f32.mxu0 %vm1476_vm0, %v1477_v4  ;;  %1418 = vmatpush3.bf16.msra.mxu0 %v1417_v62 }
 0x1c9   : > { %v745_v28 = vmax.f32 %v720_v26, 0.0  ;;  %1419 = vmatprep.subr.bf16.mxu0 %v1475_v2 }
 0x1ca   : > { %v724_v29 = vpop.f32.mrb[6].mxu1 }
 0x1cb   : > { %v725_v30 = vadd.f32 %v1095_v16, %v724_v29  ;;  %v1246_v31 = vpop.f32.mrb[7].mxu1  ;;  %1295 = vmatmul.mubr.f32.gmra.mrb[18].mxu0 %v745_v28 }
 0x1cc   : > { %1297 = vmatprep.mubr.msk.f32.mxu0 %vm1476_vm0, %v1477_v4  ;;  %1421 = vmatpush3.bf16.msra.mxu0 %v1420_v1 }
 0x1cd   : > { %v746_v32 = vmax.f32 %v725_v30, 0.0  ;;  %1422 = vmatprep.subr.bf16.mxu0 %v1475_v2 }
 0x1ce   : > { %v729_v33 = vpop.f32.mrb[8].mxu1 }
 0x1cf   : > { %v730_v34 = vadd.f32 %v1095_v16, %v729_v33  ;;  %v1249_v35 = vpop.f32.mrb[9].mxu1  ;;  %1298 = vmatmul.mubr.f32.gmra.mrb[20].mxu0 %v746_v32 }
 0x1d0   : > { %1300 = vmatprep.mubr.msk.f32.mxu0 %vm1476_vm0, %v1477_v4  ;;  %1424 = vmatpush3.bf16.msra.mxu0 %v1423_v6 }
 0x1d1   : > { %v747_v36 = vmax.f32 %v730_v34, 0.0  ;;  %1425 = vmatprep.subr.bf16.mxu0 %v1475_v2 }
 0x1d2   : > { %v734_v37 = vpop.f32.mrb[10].mxu1 }
 0x1d3   : > { %v735_v38 = vadd.f32 %v1095_v16, %v734_v37  ;;  %v1252_v39 = vpop.f32.mrb[11].mxu1  ;;  %1301 = vmatmul.mubr.f32.gmra.mrb[22].mxu0 %v747_v36 }
 0x1d4   : > { %1303 = vmatprep.mubr.msk.f32.mxu0 %vm1476_vm0, %v1477_v4  ;;  %1427 = vmatpush3.bf16.msra.mxu0 %v1426_v9 }
 0x1d5   : > { %v748_v40 = vmax.f32 %v735_v38, 0.0  ;;  %1428 = vmatprep.subr.bf16.mxu0 %v1475_v2 }
 0x1d6   : > { %v739_v41 = vpop.f32.mrb[12].mxu1 }
 0x1d7   : > { %v740_v42 = vadd.f32 %v1095_v16, %v739_v41  ;;  %v1255_v43 = vpop.f32.mrb[13].mxu1  ;;  %1304 = vmatmul.mubr.f32.gmra.mrb[24].mxu0 %v748_v40 }
 0x1d8   : > { %1306 = vmatprep.mubr.msk.f32.mxu0 %vm1476_vm0, %v1477_v4  ;;  %1430 = vmatpush3.bf16.msra.mxu0 %v1429_v12 }
 0x1d9   : > { %v749_v44 = vmax.f32 %v740_v42, 0.0  ;;  %1431 = vmatprep.subr.bf16.mxu0 %v1475_v2 }
 0x1db   : > { %1307 = vmatmul.mubr.f32.gmra.mrb[26].mxu0 %v749_v44 }
 0x1dc   : > { %1433 = vmatpush3.bf16.msra.mxu0 %v1432_v15  ;;  %1341 = vmatprep.mubr.msk.f32.mxu0 %vm1476_vm0, %v1477_v4 }
 0x1dd   : > { %1434 = vmatprep.subr.bf16.mxu0 %v1475_v2 }
 0x1e0   : > { %1436 = vmatpush3.bf16.msra.mxu0 %v1435_v47 }
 0x296   : > { %v839_v49 = vpop.f32.mrb[14].mxu0 }
 0x297   : > { %v840_v50 = vadd.f32 %v1096_v48, %v839_v49  ;;  %v1290_v51 = vpop.f32.mrb[15].mxu0 }
 0x299   : > { %v873_v52 = vmax.f32 %v840_v50, 0.0 }
 0x29a   : > { %v844_v2 = vpop.f32.mrb[16].mxu0 }
 0x29b   : > { %v845_v53 = vadd.f32 %v1096_v48, %v844_v2  ;;  %v1293_v54 = vpop.f32.mrb[17].mxu0  ;;  %1342 = vmatmul.mubr.f32.vlgmr.msra.gmra.mrb[28].mxu0 %v873_v52 }
 0x29c   : > { %1344 = vmatprep.mubr.msk.f32.mxu0 %vm1476_vm0, %v1477_v4 }
 0x29d   : > { %v874_v55 = vmax.f32 %v845_v53, 0.0 }
 0x29e   : > { %v849_v56 = vpop.f32.mrb[18].mxu0 }
 0x29f   : > { %v850_v57 = vadd.f32 %v1096_v48, %v849_v56  ;;  %v1296_v58 = vpop.f32.mrb[19].mxu0  ;;  %1345 = vmatmul.mubr.f32.gmra.mrb[30].mxu0 %v874_v55 }
 0x2a0   : > { %1347 = vmatprep.mubr.msk.f32.mxu0 %vm1476_vm0, %v1477_v4 }
 0x2a1   : > { %v875_v59 = vmax.f32 %v850_v57, 0.0 }
 0x2a2   : > { %v854_v60 = vpop.f32.mrb[20].mxu0 }
 0x2a3   : > { %v855_v61 = vadd.f32 %v1096_v48, %v854_v60  ;;  %v1299_v62 = vpop.f32.mrb[21].mxu0  ;;  %1348 = vmatmul.mubr.f32.gmra.mrb[32].mxu0 %v875_v59 }
 0x2a5   : > { %v876_v63 = vmax.f32 %v855_v61, 0.0 }
 0x2a6   : > { %v859_v0 = vpop.f32.mrb[22].mxu0 }
 0x2a7   : > { %v860_v1 = vadd.f32 %v1096_v48, %v859_v0  ;;  %v1302_v3 = vpop.f32.mrb[23].mxu0  ;;  %1351 = vmatmul.mubr.f32.vlgmr.msra.gmra.mrb[14].mxu1 %v876_v63 }
 0x2a8   : > { %1353 = vmatprep.mubr.msk.f32.mxu1 %vm1476_vm0, %v1477_v4 }
 0x2a9   : > { %v877_v5 = vmax.f32 %v860_v1, 0.0 }
 0x2aa   : > { %v864_v6 = vpop.f32.mrb[24].mxu0 }
 0x2ab   : > { %v865_v7 = vadd.f32 %v1096_v48, %v864_v6  ;;  %v1305_v8 = vpop.f32.mrb[25].mxu0  ;;  %1354 = vmatmul.mubr.f32.gmra.mrb[16].mxu1 %v877_v5 }
 0x2ac   : > { %1356 = vmatprep.mubr.msk.f32.mxu1 %vm1476_vm0, %v1477_v4 }
 0x2ad   : > { %v878_v9 = vmax.f32 %v865_v7, 0.0 }
 0x2ae   : > { %v869_v10 = vpop.f32.mrb[26].mxu0 }
 0x2af   : > { %v870_v11 = vadd.f32 %v1096_v48, %v869_v10  ;;  %v1308_v12 = vpop.f32.mrb[27].mxu0  ;;  %1357 = vmatmul.mubr.f32.gmra.mrb[18].mxu1 %v878_v9 }
 0x2b0   : > { %1359 = vmatprep.mubr.msk.f32.mxu1 %vm1476_vm0, %v1477_v4 }
 0x2b1   : > { %v879_v13 = vmax.f32 %v870_v11, 0.0 }
 0x2b3   : > { %1360 = vmatmul.mubr.f32.gmra.mrb[20].mxu1 %v879_v13 }
 0x36e   : > { %v969_v15 = vpop.f32.mrb[28].mxu0 }
 0x36f   : > { %v970_v16 = vadd.f32 %v1097_v14, %v969_v15  ;;  %v1343_v17 = vpop.f32.mrb[29].mxu0 }
 0x371   : > { %1003 = vst.msk [vmem:[%s410_s19] sm:$0xff] %vm477_vm1, %v970_v16 }
 0x372   : > { %v974_v18 = vpop.f32.mrb[30].mxu0 }
 0x373   : > { %v975_v19 = vadd.f32 %v1097_v14, %v974_v18  ;;  %v1346_v20 = vpop.f32.mrb[31].mxu0 }
 0x375   : > { %1004 = vst.msk [vmem:[%s410_s19 + $0x8] sm:$0xff] %vm477_vm1, %v975_v19 }
 0x376   : > { %v979_v4 = vpop.f32.mrb[32].mxu0 }
 0x377   : > { %v980_v21 = vadd.f32 %v1097_v14, %v979_v4  ;;  %v1349_v22 = vpop.f32.mrb[33].mxu0 }
 0x379   : > { %1005 = vst.msk [vmem:[%s410_s19 + $0x10] sm:$0xff] %vm477_vm1, %v980_v21 }
 0x37a   : > { %v984_v23 = vpop.f32.mrb[14].mxu1 }
 0x37b   : > { %v985_v24 = vadd.f32 %v1097_v14, %v984_v23  ;;  %v1352_v25 = vpop.f32.mrb[15].mxu1 }
 0x37d   : > { %1006 = vst.msk [vmem:[%s410_s19 + $0x18] sm:$0xff] %vm477_vm1, %v985_v24 }
 0x37e   : > { %v989_v26 = vpop.f32.mrb[16].mxu1 }
 0x37f   : > { %v990_v27 = vadd.f32 %v1097_v14, %v989_v26  ;;  %v1355_v28 = vpop.f32.mrb[17].mxu1 }
 0x381   : > { %1007 = vst.msk [vmem:[%s410_s19 + $0x20] sm:$0xff] %vm477_vm1, %v990_v27 }
 0x382   : > { %v994_v29 = vpop.f32.mrb[18].mxu1 }
 0x383   : > { %v995_v30 = vadd.f32 %v1097_v14, %v994_v29  ;;  %v1358_v31 = vpop.f32.mrb[19].mxu1 }
 0x385   : > { %1008 = vst.msk [vmem:[%s410_s19 + $0x28] sm:$0xff] %vm477_vm1, %v995_v30 }
 0x386   : > { %v999_v32 = vpop.f32.mrb[20].mxu1 }
 0x387   : > { %v1000_v33 = vadd.f32 %v1097_v14, %v999_v32  ;;  %v1361_v34 = vpop.f32.mrb[21].mxu1 }
 0x389   : > { %1009 = vst.msk [vmem:[%s410_s19 + $0x30] sm:$0xff] %vm477_vm1, %v1000_v33 }
 0x38a PF: > { %s21_s17 = sadd.s32 1, %s1473_s17  }
 0x38b   : > { %p18_p4 = scmp.ge.s32.totalorder %s21_s17, 4  }
 0x38d   :  { %20 = sbr.rel (!%p18_p4) target bundleno = 1 (0x1), region = 97 }

</bundles_post_ra>
